<compile_context>
chip_gen: v6e
topology: v6e:2x2x1
jax: 0.10.0
libtpu: 0.0.40
codegen_flags: <defaults>
</compile_context>

<pallas_src>
import math
import functools

import jax
import jax.numpy as jnp
from jax.experimental import pallas as pl
from jax.experimental.pallas import tpu as pltpu

MIN_LOG_STD = -6.0
MAX_LOG_STD = 0.0
MIN_ACTION = -1.0
MAX_ACTION = 1.0

_LANE = 128        # TPU lane width: hidden/output matmul dims padded to this.
_BATCH_ALIGN = 16  # bf16 sublane tile: batch tiles kept a multiple of this.
_NEG_HALF_LOG_2PI = -0.5 * math.log(2.0 * math.pi)


def _round_up(x, m):
    return (x + m - 1) // m * m


def _pad2d(x, rows, cols, value=0.0):
    r, c = x.shape
    return jnp.pad(x, ((0, rows - r), (0, cols - c)), constant_values=value)


def _actor_kernel(x_ref, w1_ref, b1_ref, w2_ref, b2_ref, w3_ref, b3_ref,
                  w4_ref, b4_ref, ls_ref, std_ref, eps_ref, out_ref):
    A = eps_ref.shape[-1]

    # ---- MLP: (Linear -> ReLU) x3 -> Linear.
    # bf16 MXU matmuls with f32 accumulation; element-wise math stays f32
    # (v5e VPU/EUP have no bf16 path).  The state arrives at native width
    # (K = state_dim); the MXU pads the contraction dim internally.
    x = x_ref[...]
    h = jnp.dot(x, w1_ref[...], preferred_element_type=jnp.float32) + b1_ref[...]
    h = jnp.maximum(h, 0.0).astype(jnp.bfloat16)
    h = jnp.dot(h, w2_ref[...], preferred_element_type=jnp.float32) + b2_ref[...]
    h = jnp.maximum(h, 0.0).astype(jnp.bfloat16)
    h = jnp.dot(h, w3_ref[...], preferred_element_type=jnp.float32) + b3_ref[...]
    h = jnp.maximum(h, 0.0).astype(jnp.bfloat16)
    mean_wide = jnp.dot(h, w4_ref[...], preferred_element_type=jnp.float32)

    # ---- Narrow sampling path: only the A real action lanes.
    mean = mean_wide[:, :A] + b4_ref[...]          # (tb, A)
    ls = ls_ref[...]                               # (1, A)  rescaled log_std
    std = std_ref[...]                             # (1, A)  exp(log_std)
    eps = eps_ref[...]                             # (tb, A) f32 N(0, 1) noise

    # rsample (reparameterization) + clamp, then Normal(mean, std).log_prob at
    # the clipped action, summed over the action dim (matches Actor.forward).
    action = jnp.clip(mean + std * eps, MIN_ACTION, MAX_ACTION)
    lp = -((action - mean) ** 2) / (2.0 * std * std) - ls + _NEG_HALF_LOG_2PI
    lp_sum = jnp.sum(lp, axis=-1, keepdims=True)   # (tb, 1)

    # ---- Fused lane-dense output slab (one dense DMA per tile):
    #   lanes [0, A) -> action,  lane A -> log_prob,  rest -> 0.
    out_ref[...] = jnp.zeros_like(out_ref)
    out_ref[:, :A] = action
    out_ref[:, A:A + 1] = lp_sum


def actor_forward(state, params, eps, *, block_batch=1024):
    """state: (B, S) f32, eps: (B, A) f32 ~ N(0, 1). Returns (action, log_prob)."""
    B, S = state.shape
    H = params["w1"].shape[1]
    A = params["w4"].shape[1]

    H_p = _round_up(H, _LANE)
    A_p = _round_up(A, _LANE)

    # Batch tile: multiple of the bf16 sublane tile; large tiles amortize the
    # per-grid-step overhead, capped so the grid keeps >=2 steps when the batch
    # allows it (v7x megacore: both TensorCores get work).
    rows = _round_up(B, _BATCH_ALIGN)
    tb = min(_round_up(block_batch, _BATCH_ALIGN), rows)
    half = _round_up((rows + 1) // 2, _BATCH_ALIGN)
    tb = max(min(tb, half), _BATCH_ALIGN)
    B_p = _round_up(B, tb)
    grid = (B_p // tb,)

    # Batch-streamed inputs at native feature width (no 128-lane padding in
    # HBM); state is bf16 (MXU operand), eps stays f32 for exact sampling math.
    x_p = _pad2d(state, B_p, S).astype(jnp.bfloat16)
    eps_p = _pad2d(eps, B_p, A).astype(jnp.float32)

    # Grid-invariant weights (VMEM-resident).  Hidden/output matmul dims are
    # padded to the 128-lane width so the big matmuls stay lane-dense.
    w1 = _pad2d(params["w1"], S, H_p).astype(jnp.bfloat16)
    w2 = _pad2d(params["w2"], H_p, H_p).astype(jnp.bfloat16)
    w3 = _pad2d(params["w3"], H_p, H_p).astype(jnp.bfloat16)
    w4 = _pad2d(params["w4"], H_p, A_p).astype(jnp.bfloat16)
    b1 = _pad2d(params["b1"], 1, H_p).astype(jnp.float32)
    b2 = _pad2d(params["b2"], 1, H_p).astype(jnp.float32)
    b3 = _pad2d(params["b3"], 1, H_p).astype(jnp.float32)
    b4 = params["b4"].astype(jnp.float32)                       # (1, A) narrow

    # Hoist the grid-invariant log_std path (sigmoid -> affine -> exp).
    ls = jax.nn.sigmoid(params["log_std"].astype(jnp.float32))
    ls = MIN_LOG_STD + ls * (MAX_LOG_STD - MIN_LOG_STD)         # (1, A)
    std = jnp.exp(ls)                                           # (1, A)

    def row_spec(shape):
        return pl.BlockSpec(shape, lambda i: (i, 0))

    def fixed_spec(shape):
        return pl.BlockSpec(shape, lambda i: (0, 0))

    # Mem-bound cost estimate from real dims and post-optimization byte counts.
    flops = 2 * B * (S * H + 2 * H * H + H * A)
    bytes_accessed = (
        B_p * S * 2 + B_p * A * 4                               # state, eps
        + (w1.size + w2.size + w3.size + w4.size) * 2           # bf16 weights
        + (b1.size + b2.size + b3.size + b4.size + ls.size + std.size) * 4
        + B_p * A_p * 4)                                        # fused output

    out = pl.pallas_call(
        _actor_kernel,
        grid=grid,
        in_specs=[
            row_spec((tb, S)),                                  # state tile (native width)
            fixed_spec((S, H_p)), fixed_spec((1, H_p)),         # w1, b1
            fixed_spec((H_p, H_p)), fixed_spec((1, H_p)),       # w2, b2
            fixed_spec((H_p, H_p)), fixed_spec((1, H_p)),       # w3, b3
            fixed_spec((H_p, A_p)), fixed_spec((1, A)),         # w4, b4
            fixed_spec((1, A)),                                 # rescaled log_std
            fixed_spec((1, A)),                                 # std
            row_spec((tb, A)),                                  # eps tile (native width)
        ],
        out_specs=row_spec((tb, A_p)),
        out_shape=jax.ShapeDtypeStruct((B_p, A_p), jnp.float32),
        compiler_params=pltpu.CompilerParams(
            dimension_semantics=("parallel",)),
        cost_estimate=pl.CostEstimate(
            flops=flops, transcendentals=0, bytes_accessed=bytes_accessed),
    )(x_p, w1, b1, w2, b2, w3, b3, w4, b4, ls, std, eps_p)

    # Fused slab: lanes [0, A) = action, lane A = log_prob.
    return out[:B, :A], out[:B, A:A + 1]


def init_params(key, state_dim, action_dim, hidden_dim):
    """Deterministic synthetic init (shapes match nn.Linear, weights transposed)."""
    ks = jax.random.split(key, 8)

    def linear(kw, kb, fan_in, fan_out):
        bound = 1.0 / math.sqrt(fan_in)
        w = jax.random.uniform(kw, (fan_in, fan_out), jnp.float32, -bound, bound)
        b = jax.random.uniform(kb, (1, fan_out), jnp.float32, -bound, bound)
        return w, b

    w1, b1 = linear(ks[0], ks[1], state_dim, hidden_dim)
    w2, b2 = linear(ks[2], ks[3], hidden_dim, hidden_dim)
    w3, b3 = linear(ks[4], ks[5], hidden_dim, hidden_dim)
    w4, b4 = linear(ks[6], ks[7], hidden_dim, action_dim)
    log_std = jnp.zeros((1, action_dim), jnp.float32)   # nn.Parameter(zeros(action_dim))
    return {"w1": w1, "b1": b1, "w2": w2, "b2": b2,
            "w3": w3, "b3": b3, "w4": w4, "b4": b4, "log_std": log_std}


def _reference_forward(state, params, eps):
    """Pure-JAX reference of Actor.forward under the same bf16-matmul /
    f32-accumulate numerical contract as the kernel."""
    def dot_bf16(x, w):
        return jnp.dot(x.astype(jnp.bfloat16), w.astype(jnp.bfloat16),
                       preferred_element_type=jnp.float32)

    h = jnp.maximum(dot_bf16(state, params["w1"]) + params["b1"], 0.0)
    h = jnp.maximum(dot_bf16(h, params["w2"]) + params["b2"], 0.0)
    h = jnp.maximum(dot_bf16(h, params["w3"]) + params["b3"], 0.0)
    mean = dot_bf16(h, params["w4"]) + params["b4"]
    ls = jax.nn.sigmoid(params["log_std"])
    ls = MIN_LOG_STD + ls * (MAX_LOG_STD - MIN_LOG_STD)
    std = jnp.exp(ls)
    action = jnp.clip(mean + std * eps, MIN_ACTION, MAX_ACTION)
    lp = (-((action - mean) ** 2) / (2.0 * std * std) - ls
          - 0.5 * math.log(2.0 * math.pi))
    return action, jnp.sum(lp, axis=-1, keepdims=True)


if __name__ == "__main__":
    state_dim, action_dim, hidden_dim = 16, 8, 32
    batch = 64                      # small, but enough to exercise the grid

    key = jax.random.PRNGKey(0)
    k_params, k_state, k_eps = jax.random.split(key, 3)

    params = init_params(k_params, state_dim, action_dim, hidden_dim)
    state = jax.random.normal(k_state, (batch, state_dim), jnp.float32)
    eps = jax.random.normal(k_eps, (batch, action_dim), jnp.float32)

    fwd = jax.jit(functools.partial(actor_forward, block_batch=16))  # grid=(4,)
    action, log_prob = jax.block_until_ready(fwd(state, params, eps))

    ref_action, ref_log_prob = _reference_forward(state, params, eps)
    assert action.shape == (batch, action_dim)
    assert log_prob.shape == (batch, 1)
    assert jnp.allclose(action, ref_action, atol=1e-3, rtol=1e-3), (
        float(jnp.max(jnp.abs(action - ref_action))))
    assert jnp.allclose(log_prob, ref_log_prob, atol=1e-2, rtol=1e-2), (
        float(jnp.max(jnp.abs(log_prob - ref_log_prob))))

    # Note: log_prob is evaluated at the clipped action under the unclipped
    # Gaussian, exactly as in the PyTorch Actor.forward reference.
    print("KERNEL_OK")
</pallas_src>

<mosaic_0001>
module attributes {stable_mosaic.version = 11 : i64} {
  func.func @_actor_kernel(%arg0: i32, %arg1: memref<16x16xbf16, #tpu.memory_space<vmem>>, %arg2: memref<16x128xbf16, #tpu.memory_space<vmem>>, %arg3: memref<1x128xf32, #tpu.memory_space<vmem>>, %arg4: memref<128x128xbf16, #tpu.memory_space<vmem>>, %arg5: memref<1x128xf32, #tpu.memory_space<vmem>>, %arg6: memref<128x128xbf16, #tpu.memory_space<vmem>>, %arg7: memref<1x128xf32, #tpu.memory_space<vmem>>, %arg8: memref<128x128xbf16, #tpu.memory_space<vmem>>, %arg9: memref<1x8xf32, #tpu.memory_space<vmem>>, %arg10: memref<1x8xf32, #tpu.memory_space<vmem>>, %arg11: memref<1x8xf32, #tpu.memory_space<vmem>>, %arg12: memref<16x8xf32, #tpu.memory_space<vmem>>, %arg13: memref<16x128xf32, #tpu.memory_space<vmem>>) attributes {dimension_semantics = [#tpu.dimension_semantics<parallel>], iteration_bounds = array<i64: 4>, scalar_prefetch = 0 : i64, scratch_operands = 0 : i64, tpu.core_type = #tpu.core_type<tc>, window_params = [{transform_indices = @transform_0, window_bounds = array<i64: 16, 16>}, {pipeline_mode = #tpu.pipeline_mode<synchronous>, transform_indices = @transform_1, window_bounds = array<i64: 16, 128>}, {pipeline_mode = #tpu.pipeline_mode<synchronous>, transform_indices = @transform_2, window_bounds = array<i64: 1, 128>}, {pipeline_mode = #tpu.pipeline_mode<synchronous>, transform_indices = @transform_3, window_bounds = array<i64: 128, 128>}, {pipeline_mode = #tpu.pipeline_mode<synchronous>, transform_indices = @transform_4, window_bounds = array<i64: 1, 128>}, {pipeline_mode = #tpu.pipeline_mode<synchronous>, transform_indices = @transform_5, window_bounds = array<i64: 128, 128>}, {pipeline_mode = #tpu.pipeline_mode<synchronous>, transform_indices = @transform_6, window_bounds = array<i64: 1, 128>}, {pipeline_mode = #tpu.pipeline_mode<synchronous>, transform_indices = @transform_7, window_bounds = array<i64: 128, 128>}, {pipeline_mode = #tpu.pipeline_mode<synchronous>, transform_indices = @transform_8, window_bounds = array<i64: 1, 8>}, {pipeline_mode = #tpu.pipeline_mode<synchronous>, transform_indices = @transform_9, window_bounds = array<i64: 1, 8>}, {pipeline_mode = #tpu.pipeline_mode<synchronous>, transform_indices = @transform_10, window_bounds = array<i64: 1, 8>}, {transform_indices = @transform_11, window_bounds = array<i64: 16, 8>}, {transform_indices = @transform_12, window_bounds = array<i64: 16, 128>}]} {
    %c0 = arith.constant 0 : index
    %c0_0 = arith.constant 0 : index
    %0 = vector.load %arg1[%c0, %c0_0] : memref<16x16xbf16, #tpu.memory_space<vmem>>, vector<16x16xbf16>
    %c0_1 = arith.constant 0 : index
    %c0_2 = arith.constant 0 : index
    %1 = vector.load %arg2[%c0_1, %c0_2] : memref<16x128xbf16, #tpu.memory_space<vmem>>, vector<16x128xbf16>
    %cst = arith.constant dense<0.000000e+00> : vector<16x128xf32>
    %2 = tpu.matmul %0, %1, %cst {dimension_numbers = #tpu.dot_dimension_numbers<[1], [0], [0], [1], [0, 0, 1, 1], [], []>} : vector<16x16xbf16>, vector<16x128xbf16>, vector<16x128xf32> -> vector<16x128xf32>
    %c0_3 = arith.constant 0 : index
    %c0_4 = arith.constant 0 : index
    %3 = vector.load %arg3[%c0_3, %c0_4] : memref<1x128xf32, #tpu.memory_space<vmem>>, vector<1x128xf32>
    %4 = vector.broadcast %3 : vector<1x128xf32> to vector<16x128xf32>
    %5 = arith.addf %2, %4 : vector<16x128xf32>
    %cst_5 = arith.constant 0.000000e+00 : f32
    %6 = vector.broadcast %cst_5 : f32 to vector<16x128xf32>
    %7 = arith.maximumf %5, %6 : vector<16x128xf32>
    %8 = arith.truncf %7 : vector<16x128xf32> to vector<16x128xbf16>
    %c0_6 = arith.constant 0 : index
    %c0_7 = arith.constant 0 : index
    %9 = vector.load %arg4[%c0_6, %c0_7] : memref<128x128xbf16, #tpu.memory_space<vmem>>, vector<128x128xbf16>
    %cst_8 = arith.constant dense<0.000000e+00> : vector<16x128xf32>
    %10 = tpu.matmul %8, %9, %cst_8 {dimension_numbers = #tpu.dot_dimension_numbers<[1], [0], [0], [1], [0, 0, 1, 1], [], []>} : vector<16x128xbf16>, vector<128x128xbf16>, vector<16x128xf32> -> vector<16x128xf32>
    %c0_9 = arith.constant 0 : index
    %c0_10 = arith.constant 0 : index
    %11 = vector.load %arg5[%c0_9, %c0_10] : memref<1x128xf32, #tpu.memory_space<vmem>>, vector<1x128xf32>
    %12 = vector.broadcast %11 : vector<1x128xf32> to vector<16x128xf32>
    %13 = arith.addf %10, %12 : vector<16x128xf32>
    %cst_11 = arith.constant 0.000000e+00 : f32
    %14 = vector.broadcast %cst_11 : f32 to vector<16x128xf32>
    %15 = arith.maximumf %13, %14 : vector<16x128xf32>
    %16 = arith.truncf %15 : vector<16x128xf32> to vector<16x128xbf16>
    %c0_12 = arith.constant 0 : index
    %c0_13 = arith.constant 0 : index
    %17 = vector.load %arg6[%c0_12, %c0_13] : memref<128x128xbf16, #tpu.memory_space<vmem>>, vector<128x128xbf16>
    %cst_14 = arith.constant dense<0.000000e+00> : vector<16x128xf32>
    %18 = tpu.matmul %16, %17, %cst_14 {dimension_numbers = #tpu.dot_dimension_numbers<[1], [0], [0], [1], [0, 0, 1, 1], [], []>} : vector<16x128xbf16>, vector<128x128xbf16>, vector<16x128xf32> -> vector<16x128xf32>
    %c0_15 = arith.constant 0 : index
    %c0_16 = arith.constant 0 : index
    %19 = vector.load %arg7[%c0_15, %c0_16] : memref<1x128xf32, #tpu.memory_space<vmem>>, vector<1x128xf32>
    %20 = vector.broadcast %19 : vector<1x128xf32> to vector<16x128xf32>
    %21 = arith.addf %18, %20 : vector<16x128xf32>
    %cst_17 = arith.constant 0.000000e+00 : f32
    %22 = vector.broadcast %cst_17 : f32 to vector<16x128xf32>
    %23 = arith.maximumf %21, %22 : vector<16x128xf32>
    %24 = arith.truncf %23 : vector<16x128xf32> to vector<16x128xbf16>
    %c0_18 = arith.constant 0 : index
    %c0_19 = arith.constant 0 : index
    %25 = vector.load %arg8[%c0_18, %c0_19] : memref<128x128xbf16, #tpu.memory_space<vmem>>, vector<128x128xbf16>
    %cst_20 = arith.constant dense<0.000000e+00> : vector<16x128xf32>
    %26 = tpu.matmul %24, %25, %cst_20 {dimension_numbers = #tpu.dot_dimension_numbers<[1], [0], [0], [1], [0, 0, 1, 1], [], []>} : vector<16x128xbf16>, vector<128x128xbf16>, vector<16x128xf32> -> vector<16x128xf32>
    %27 = vector.extract_strided_slice %26 {offsets = [0, 0], sizes = [16, 8], strides = [1, 1]} : vector<16x128xf32> to vector<16x8xf32>
    %c0_21 = arith.constant 0 : index
    %c0_22 = arith.constant 0 : index
    %28 = vector.load %arg9[%c0_21, %c0_22] : memref<1x8xf32, #tpu.memory_space<vmem>>, vector<1x8xf32>
    %29 = vector.broadcast %28 : vector<1x8xf32> to vector<16x8xf32>
    %30 = arith.addf %27, %29 : vector<16x8xf32>
    %c0_23 = arith.constant 0 : index
    %c0_24 = arith.constant 0 : index
    %31 = vector.load %arg10[%c0_23, %c0_24] : memref<1x8xf32, #tpu.memory_space<vmem>>, vector<1x8xf32>
    %c0_25 = arith.constant 0 : index
    %c0_26 = arith.constant 0 : index
    %32 = vector.load %arg11[%c0_25, %c0_26] : memref<1x8xf32, #tpu.memory_space<vmem>>, vector<1x8xf32>
    %c0_27 = arith.constant 0 : index
    %c0_28 = arith.constant 0 : index
    %33 = vector.load %arg12[%c0_27, %c0_28] : memref<16x8xf32, #tpu.memory_space<vmem>>, vector<16x8xf32>
    %34 = vector.broadcast %32 : vector<1x8xf32> to vector<16x8xf32>
    %35 = arith.mulf %34, %33 : vector<16x8xf32>
    %36 = arith.addf %30, %35 : vector<16x8xf32>
    %cst_29 = arith.constant -1.000000e+00 : f32
    %cst_30 = arith.constant 1.000000e+00 : f32
    %37 = vector.broadcast %cst_29 : f32 to vector<16x8xf32>
    %38 = arith.maximumf %37, %36 : vector<16x8xf32>
    %39 = vector.broadcast %cst_30 : f32 to vector<16x8xf32>
    %40 = arith.minimumf %39, %38 : vector<16x8xf32>
    %41 = arith.subf %40, %30 : vector<16x8xf32>
    %42 = arith.mulf %41, %41 : vector<16x8xf32>
    %cst_31 = arith.constant 0.000000e+00 : f32
    %43 = vector.broadcast %cst_31 : f32 to vector<16x8xf32>
    %44 = arith.subf %43, %42 : vector<16x8xf32>
    %cst_32 = arith.constant 2.000000e+00 : f32
    %45 = vector.broadcast %cst_32 : f32 to vector<1x8xf32>
    %46 = arith.mulf %45, %32 : vector<1x8xf32>
    %47 = arith.mulf %46, %32 : vector<1x8xf32>
    %48 = vector.broadcast %47 : vector<1x8xf32> to vector<16x8xf32>
    %49 = arith.divf %44, %48 : vector<16x8xf32>
    %50 = vector.broadcast %31 : vector<1x8xf32> to vector<16x8xf32>
    %51 = arith.subf %49, %50 : vector<16x8xf32>
    %cst_33 = arith.constant -0.918938517 : f32
    %52 = vector.broadcast %cst_33 : f32 to vector<16x8xf32>
    %53 = arith.addf %51, %52 : vector<16x8xf32>
    %cst_34 = arith.constant dense<0.000000e+00> : vector<16xf32>
    %54 = vector.multi_reduction <add>, %53, %cst_34 [1] : vector<16x8xf32> to vector<16xf32>
    %55 = vector.shape_cast %54 : vector<16xf32> to vector<16x1xf32>
    %cst_35 = arith.constant 0.000000e+00 : f32
    %56 = vector.broadcast %cst_35 : f32 to vector<16x128xf32>
    %c0_36 = arith.constant 0 : index
    %c0_37 = arith.constant 0 : index
    %57 = vector.load %arg13[%c0_36, %c0_37] : memref<16x128xf32, #tpu.memory_space<vmem>>, vector<16x128xf32>
    tpu.vector_store %arg13[%c0_36, %c0_37], %56 {strides = array<i32>} : memref<16x128xf32, #tpu.memory_space<vmem>>, vector<16x128xf32>,
    %c0_38 = arith.constant 0 : index
    %c0_39 = arith.constant 0 : index
    %58 = vector.load %arg13[%c0_38, %c0_39] : memref<16x128xf32, #tpu.memory_space<vmem>>, vector<16x8xf32>
    tpu.vector_store %arg13[%c0_38, %c0_39], %40 {strides = array<i32>} : memref<16x128xf32, #tpu.memory_space<vmem>>, vector<16x8xf32>,
    %c0_40 = arith.constant 0 : index
    %c8 = arith.constant 8 : index
    %59 = vector.load %arg13[%c0_40, %c8] : memref<16x128xf32, #tpu.memory_space<vmem>>, vector<16x1xf32>
    tpu.vector_store %arg13[%c0_40, %c8], %55 {strides = array<i32>} : memref<16x128xf32, #tpu.memory_space<vmem>>, vector<16x1xf32>,
    return
  }
  func.func @transform_0(%arg0: i32) -> (i32, i32) {
    %c0_i32 = arith.constant 0 : i32
    %c0_i32_0 = arith.constant 0 : i32
    return %arg0, %c0_i32 : i32, i32
  }
  func.func @transform_1(%arg0: i32) -> (i32, i32) {
    %c0_i32 = arith.constant 0 : i32
    %c0_i32_0 = arith.constant 0 : i32
    %c0_i32_1 = arith.constant 0 : i32
    return %c0_i32, %c0_i32_0 : i32, i32
  }
  func.func @transform_2(%arg0: i32) -> (i32, i32) {
    %c0_i32 = arith.constant 0 : i32
    %c0_i32_0 = arith.constant 0 : i32
    %c0_i32_1 = arith.constant 0 : i32
    return %c0_i32, %c0_i32_0 : i32, i32
  }
  func.func @transform_3(%arg0: i32) -> (i32, i32) {
    %c0_i32 = arith.constant 0 : i32
    %c0_i32_0 = arith.constant 0 : i32
    %c0_i32_1 = arith.constant 0 : i32
    return %c0_i32, %c0_i32_0 : i32, i32
  }
  func.func @transform_4(%arg0: i32) -> (i32, i32) {
    %c0_i32 = arith.constant 0 : i32
    %c0_i32_0 = arith.constant 0 : i32
    %c0_i32_1 = arith.constant 0 : i32
    return %c0_i32, %c0_i32_0 : i32, i32
  }
  func.func @transform_5(%arg0: i32) -> (i32, i32) {
    %c0_i32 = arith.constant 0 : i32
    %c0_i32_0 = arith.constant 0 : i32
    %c0_i32_1 = arith.constant 0 : i32
    return %c0_i32, %c0_i32_0 : i32, i32
  }
  func.func @transform_6(%arg0: i32) -> (i32, i32) {
    %c0_i32 = arith.constant 0 : i32
    %c0_i32_0 = arith.constant 0 : i32
    %c0_i32_1 = arith.constant 0 : i32
    return %c0_i32, %c0_i32_0 : i32, i32
  }
  func.func @transform_7(%arg0: i32) -> (i32, i32) {
    %c0_i32 = arith.constant 0 : i32
    %c0_i32_0 = arith.constant 0 : i32
    %c0_i32_1 = arith.constant 0 : i32
    return %c0_i32, %c0_i32_0 : i32, i32
  }
  func.func @transform_8(%arg0: i32) -> (i32, i32) {
    %c0_i32 = arith.constant 0 : i32
    %c0_i32_0 = arith.constant 0 : i32
    %c0_i32_1 = arith.constant 0 : i32
    return %c0_i32, %c0_i32_0 : i32, i32
  }
  func.func @transform_9(%arg0: i32) -> (i32, i32) {
    %c0_i32 = arith.constant 0 : i32
    %c0_i32_0 = arith.constant 0 : i32
    %c0_i32_1 = arith.constant 0 : i32
    return %c0_i32, %c0_i32_0 : i32, i32
  }
  func.func @transform_10(%arg0: i32) -> (i32, i32) {
    %c0_i32 = arith.constant 0 : i32
    %c0_i32_0 = arith.constant 0 : i32
    %c0_i32_1 = arith.constant 0 : i32
    return %c0_i32, %c0_i32_0 : i32, i32
  }
  func.func @transform_11(%arg0: i32) -> (i32, i32) {
    %c0_i32 = arith.constant 0 : i32
    %c0_i32_0 = arith.constant 0 : i32
    return %arg0, %c0_i32 : i32, i32
  }
  func.func @transform_12(%arg0: i32) -> (i32, i32) {
    %c0_i32 = arith.constant 0 : i32
    %c0_i32_0 = arith.constant 0 : i32
    return %arg0, %c0_i32 : i32, i32
  }
}

</mosaic_0001>

<bundles_post_ra>
// kernel: actor_forward.1
= control target key start
LH: loop header
LB: loop body
LE: loop exit
PB: predicated region body
PF: predicated region fallthrough
CT: control target
= control target key end

     0   :  { %s1236_s21 = smov 0   ;;  %s1400_s0 = inlined_call_operand.vmem [shape: bf16[64,16], index: 0, kind: input, shape index: {}]   ;;  %s1401_s1 = inlined_call_operand.vmem [shape: bf16[16,128], index: 1, kind: input, shape index: {}]   ;;  %s1402_s2 = inlined_call_operand.vmem [shape: f32[1,128], index: 2, kind: input, shape index: {}]   ;;  %s1403_s3 = inlined_call_operand.vmem [shape: bf16[128,128], index: 3, kind: input, shape index: {}]   ;;  %s1404_s4 = inlined_call_operand.vmem [shape: f32[1,128], index: 4, kind: input, shape index: {}]   ;;  %s1405_s5 = inlined_call_operand.vmem [shape: bf16[128,128], index: 5, kind: input, shape index: {}]   ;;  %s1406_s6 = inlined_call_operand.vmem [shape: f32[1,128], index: 6, kind: input, shape index: {}]   ;;  %s1407_s7 = inlined_call_operand.vmem [shape: bf16[128,128], index: 7, kind: input, shape index: {}]   ;;  %s1408_s8 = inlined_call_operand.vmem [shape: f32[1,8], index: 8, kind: input, shape index: {}]   ;;  %s1409_s9 = inlined_call_operand.vmem [shape: f32[1,8], index: 9, kind: input, shape index: {}]   ;;  %s1410_s10 = inlined_call_operand.vmem [shape: f32[1,8], index: 10, kind: input, shape index: {}]   ;;  %s1411_s11 = inlined_call_operand.vmem [shape: f32[64,8], index: 11, kind: input, shape index: {}]   ;;  %s1412_s12 = inlined_call_operand.vmem [shape: f32[64,128], index: 12, kind: output, shape index: {}]  }
   0x1 LB: > { %s981_s22 = sadd.s32 4294967295, %s1167_s21   ;;  %p985_p0 = scmp.ge.s32.totalorder %s1167_s21, 1  ;;  %s1167_s21 = sphi %s1236_s21, %s22_s21  }
   0x2   : > { %p374_p1 = scmp.lt.s32.totalorder %s1167_s21, 5 }
   0x4   : > { %p375_p2 = pnand %p985_p0, %p374_p1 }
   0x5   : > { %s986_s25 = sshll.u32 (!%p375_p2), %s981_s22, 1 }
   0x6   : > { %378 = sbr.rel (%p375_p2) target bundleno = 980 (0x3d4), region = 68  ;;  %p422_p3 = scmp.lt.s32.totalorder (!%p375_p2), %s986_s25, 7 }
   0xb   : > { %v1133_v0 = vld [vmem:[%s1401_s1] sm:$0xff]   ;;  %v1169_v1 = vmov 0.0   ;;  %v1135_v2 = vld [vmem:[%s1403_s3 + $0x38] sm:$0xff]   ;;  %vm1170_vm0 = vmmov 0   ;;  %v1136_v3 = vld [vmem:[%s1403_s3 + $0x30] sm:$0xff]   ;;  %s1414_s25 = smov (!%p422_p3, %s986_s25), 7  ;;  %v859_v57 = vlaneseq }
   0xc   : > { %1057 = vmatprep.subr.bf16.mxu0 %v1169_v1  ;;  %1063 = vmatprep.subr.bf16.mxu1 %v1169_v1  ;;  %s987_s30 = sshll.u32 %s1414_s25, 2  ;;  %vm462_vm1 = vcmask 130048   ;;  %v1137_v4 = vld [vmem:[%s1403_s3 + $0x28] sm:$0xff]   ;;  %v1138_v6 = vld [vmem:[%s1403_s3 + $0x20] sm:$0xff]   ;;  %v1139_v7 = vld [vmem:[%s1403_s3 + $0x18] sm:$0xff]   ;;  %s989_s16 = sshll.u32 %s1414_s25, 3 }
   0xd   : > { %1058 = vmatpush3.bf16.msra.mxu0 %v1133_v0  ;;  %1059 = vmatprep.mubr.msk.bf16.mxu0 %vm1170_vm0, %v1169_v1  ;;  %s425_s17 = scalar_lea.vmem %s1400_s0, %s987_s30  ;;  %v1140_v8 = vld [vmem:[%s1403_s3 + $0x10] sm:$0xff]   ;;  %v1141_v9 = vld [vmem:[%s1403_s3 + $0x8] sm:$0xff]   ;;  %v1142_v10 = vld [vmem:[%s1403_s3] sm:$0xff]   ;;  %s1368_s19 = scalar_lea.vmem %s1412_s12, %s989_s16  ;;  %v860_v59 = vshrl.u32 %v859_v57, 7  ;;  %vm899_vm2 = vcmask 64512   ;;  %vm910_vm3 = vcmask 72768  }
   0xe   : > { %1064 = vmatpush3.bf16.msra.mxu1 %v1135_v2  ;;  %1079 = vmatprep.mubr.msk.bf16.mxu1 %vm1170_vm0, %v1169_v1  ;;  %v1134_v5 = vld [vmem:[%s425_s17] sm:$0xff]   ;;  %v1143_v11 = vld [vmem:[%s1405_s5 + $0x38] sm:$0xff]   ;;  %v1144_v12 = vld [vmem:[%s1405_s5 + $0x30] sm:$0xff]   ;;  %906 = vst [vmem:[%s1368_s19] sm:$0xff] %v1169_v1  ;;  %s431_s27 = scalar_lea.vmem %s1411_s11, %s989_s16 }
   0xf   : > { %1065 = vmatprep.subr.bf16.mxu1 %v1169_v1  ;;  %1083 = vmatprep.subr.bf16.mxu0 %v1169_v1  ;;  %v1145_v13 = vld [vmem:[%s1405_s5 + $0x28] sm:$0xff]   ;;  %v1146_v14 = vld [vmem:[%s1405_s5 + $0x20] sm:$0xff]   ;;  %v1147_v15 = vld [vmem:[%s1405_s5 + $0x18] sm:$0xff]   ;;  %907 = vst [vmem:[%s1368_s19 + $0x8] sm:$0xff] %v1169_v1  ;;  %v861_v61 = vsub.s32 0, %v860_v59 }
  0x10   : > { %1060 = vmatmul.mubr.msk.bf16.vlgmr.msra.gmra.mxu0 %vm462_vm1, %v1134_v5  ;;  %v992_v16 = vld [vmem:[%s1402_s2] ss:$0 sm:$0xff]  ;;  %v1148_v26 = vld [vmem:[%s1405_s5 + $0x10] sm:$0xff]   ;;  %v1149_v27 = vld [vmem:[%s1405_s5 + $0x8] sm:$0xff]  }
  0x11   : > { %1099 = vmatprep.mubr.msk.bf16.mxu0 %vm1170_vm0, %v1169_v1  ;;  %1084 = vmatpush3.bf16.msra.mxu0 %v1143_v11  ;;  %v1150_v28 = vld [vmem:[%s1405_s5] sm:$0xff]   ;;  %v1151_v29 = vld [vmem:[%s1407_s7 + $0x38] sm:$0xff]   ;;  %v1152_v30 = vld [vmem:[%s1407_s7 + $0x30] sm:$0xff]  }
  0x12   : > { %1066 = vmatpush3.bf16.msra.mxu1 %v1136_v3  ;;  %1085 = vmatprep.subr.bf16.mxu0 %v1169_v1  ;;  %v1153_v31 = vld [vmem:[%s1407_s7 + $0x28] sm:$0xff]   ;;  %v1154_v32 = vld [vmem:[%s1407_s7 + $0x20] sm:$0xff]   ;;  %v1155_v33 = vld [vmem:[%s1407_s7 + $0x18] sm:$0xff]  }
  0x13   : > { %1067 = vmatprep.subr.bf16.mxu1 %v1169_v1  ;;  %v996_v34 = vld [vmem:[%s1404_s4] ss:$0 sm:$0xff]  ;;  %v1156_v44 = vld [vmem:[%s1407_s7 + $0x10] sm:$0xff]   ;;  %v1157_v45 = vld [vmem:[%s1407_s7 + $0x8] sm:$0xff]  }
  0x14   : > { %v1158_v46 = vld [vmem:[%s1407_s7] sm:$0xff]   ;;  %v857_v5 = vld [vmem:[%s431_s27 + $0x8] sm:$0xff] }
  0x15   : > { %1086 = vmatpush3.bf16.msra.mxu0 %v1144_v12  ;;  %v1005_v47 = vld [vmem:[%s1406_s6] ss:$0 sm:$0xff] }
  0x16   : > { %1068 = vmatpush3.bf16.msra.mxu1 %v1137_v4  ;;  %1087 = vmatprep.subr.bf16.mxu0 %v1169_v1  ;;  %v855_v58 = vld [vmem:[%s1410_s10] sm:$0x1] }
  0x17   : > { %1069 = vmatprep.subr.bf16.mxu1 %v1169_v1  ;;  %v878_v60 = vmul.f32 2.0, %v855_v58  ;;  %v862_v0 = vrot.slane %v855_v58, %v861_v61  ;;  %v1022_v2 = vld [vmem:[%s1408_s8] ss:$0 sm:$0xff] }
  0x19   : > { %1088 = vmatpush3.bf16.msra.mxu0 %v1145_v13  ;;  %v879_v62 = vmul.f32 %v878_v60, %v855_v58 }
  0x1a   : > { %1070 = vmatpush3.bf16.msra.mxu1 %v1138_v6  ;;  %1089 = vmatprep.subr.bf16.mxu0 %v1169_v1 }
  0x1b   : > { %1071 = vmatprep.subr.bf16.mxu1 %v1169_v1  ;;  %v884_v63 = vrot.slane %v879_v62, %v861_v61 }
  0x1d   : > { %1090 = vmatpush3.bf16.msra.mxu0 %v1146_v14  ;;  %1159 = vrcp.f32 %v884_v63 }
  0x1e   : > { %1072 = vmatpush3.bf16.msra.mxu1 %v1139_v7  ;;  %1091 = vmatprep.subr.bf16.mxu0 %v1169_v1 }
  0x1f   : > { %1073 = vmatprep.subr.bf16.mxu1 %v1169_v1 }
  0x21   : > { %1092 = vmatpush3.bf16.msra.mxu0 %v1147_v15 }
  0x22   : > { %1074 = vmatpush3.bf16.msra.mxu1 %v1140_v8  ;;  %1093 = vmatprep.subr.bf16.mxu0 %v1169_v1 }
  0x23   : > { %1075 = vmatprep.subr.bf16.mxu1 %v1169_v1 }
  0x25   : > { %1094 = vmatpush3.bf16.msra.mxu0 %v1148_v26 }
  0x26   : > { %1076 = vmatpush3.bf16.msra.mxu1 %v1141_v9  ;;  %1095 = vmatprep.subr.bf16.mxu0 %v1169_v1  ;;  %v865_v9 = vmul.f32 %v862_v0, %v857_v5 }
  0x27   : > { %1077 = vmatprep.subr.bf16.mxu1 %v1169_v1 }
  0x29   : > { %1096 = vmatpush3.bf16.msra.mxu0 %v1149_v27 }
  0x2a   : > { %1078 = vmatpush3.bf16.msra.mxu1 %v1142_v10  ;;  %1097 = vmatprep.subr.bf16.mxu0 %v1169_v1 }
  0x2b   : > { %1103 = vmatprep.subr.bf16.mxu1 %v1169_v1 }
  0x2d   : > { %1098 = vmatpush3.bf16.msra.mxu0 %v1150_v28 }
  0xd0   : > { %v500_v17 = vpop.f32.mrf.mxu0 }
  0xd1   : > { %v501_v19 = vadd.f32 %v992_v16, %v500_v17 }
  0xd2   : > { %v1061_v18 = vpop.f32.mrf.mxu0 }
  0xd3   : > { %v507_v23 = vmax.f32 %v501_v19, 0.0  ;;  %v1160_v18 = vpop.eup %1159 }
  0xd4   : > { %v503_v20 = vpop.f32.mrf.mxu0 }
  0xd5   : > { %v504_v21 = vadd.f32 %v992_v16, %v503_v20 }
  0xd6   : > { %v1062_v22 = vpop.f32.mrf.mxu0 }
  0xd7   : > { %v508_v24 = vmax.f32 %v504_v21, 0.0  ;;  %v1025_v21 = vld [vmem:[%s1409_s9] ss:$0 sm:$0xff] }
  0xd9   : > { %v509_v25 = vpack.c.bf16 %v508_v24, %v507_v23 }
  0xdb   : > { %1080 = vmatmul.mubr.bf16.vlgmr.msra.gmra.mxu1 %v509_v25 }
  0xdc   : > { %1119 = vmatprep.mubr.msk.bf16.mxu1 %vm1170_vm0, %v1169_v1  ;;  %1104 = vmatpush3.bf16.msra.mxu1 %v1151_v29 }
  0xdd   : > { %1105 = vmatprep.subr.bf16.mxu1 %v1169_v1 }
  0xe0   : > { %1106 = vmatpush3.bf16.msra.mxu1 %v1152_v30 }
  0xe1   : > { %1107 = vmatprep.subr.bf16.mxu1 %v1169_v1 }
  0xe4   : > { %1108 = vmatpush3.bf16.msra.mxu1 %v1153_v31 }
  0xe5   : > { %1109 = vmatprep.subr.bf16.mxu1 %v1169_v1 }
  0xe8   : > { %1110 = vmatpush3.bf16.msra.mxu1 %v1154_v32 }
  0xe9   : > { %1111 = vmatprep.subr.bf16.mxu1 %v1169_v1 }
  0xec   : > { %1112 = vmatpush3.bf16.msra.mxu1 %v1155_v33 }
  0xed   : > { %1113 = vmatprep.subr.bf16.mxu1 %v1169_v1 }
  0xf0   : > { %1114 = vmatpush3.bf16.msra.mxu1 %v1156_v44 }
  0xf1   : > { %1115 = vmatprep.subr.bf16.mxu1 %v1169_v1 }
  0xf4   : > { %1116 = vmatpush3.bf16.msra.mxu1 %v1157_v45 }
  0xf5   : > { %1117 = vmatprep.subr.bf16.mxu1 %v1169_v1  ;;  %v856_v1 = vld [vmem:[%s431_s27] sm:$0xff] }
  0xf6   : > { %v864_v3 = vmul.f32 %v862_v0, %v856_v1 }
  0xf8   : > { %1118 = vmatpush3.bf16.msra.mxu1 %v1158_v46 }
 0x19b   : > { %v615_v35 = vpop.f32.mrf.mxu1 }
 0x19c   : > { %v616_v37 = vadd.f32 %v996_v34, %v615_v35 }
 0x19d   : > { %v1081_v36 = vpop.f32.mrf.mxu1 }
 0x19e   : > { %v622_v41 = vmax.f32 %v616_v37, 0.0 }
 0x19f   : > { %v618_v38 = vpop.f32.mrf.mxu1 }
 0x1a0   : > { %v619_v39 = vadd.f32 %v996_v34, %v618_v38 }
 0x1a1   : > { %v1082_v40 = vpop.f32.mrf.mxu1 }
 0x1a2   : > { %v623_v42 = vmax.f32 %v619_v39, 0.0 }
 0x1a4   : > { %v624_v43 = vpack.c.bf16 %v623_v42, %v622_v41 }
 0x1a6   : > { %1100 = vmatmul.mubr.bf16.vlgmr.msra.gmra.mxu0 %v624_v43 }
 0x266   : > { %v730_v48 = vpop.f32.mrf.mxu0 }
 0x267   : > { %v731_v50 = vadd.f32 %v1005_v47, %v730_v48 }
 0x268   : > { %v1101_v49 = vpop.f32.mrf.mxu0 }
 0x269   : > { %v737_v54 = vmax.f32 %v731_v50, 0.0 }
 0x26a   : > { %v733_v51 = vpop.f32.mrf.mxu0 }
 0x26b   : > { %v734_v52 = vadd.f32 %v1005_v47, %v733_v51 }
 0x26c   : > { %v1102_v53 = vpop.f32.mrf.mxu0 }
 0x26d   : > { %v738_v55 = vmax.f32 %v734_v52, 0.0 }
 0x26f   : > { %v739_v56 = vpack.c.bf16 %v738_v55, %v737_v54 }
 0x271   : > { %1120 = vmatmul.mubr.bf16.vlgmr.msra.gmra.mxu1 %v739_v56 }
 0x331   : > { %v838_v4 = vpop.f32.mrf.mxu1 }
 0x332   : > { %v852_v6 = vadd.f32 %v1022_v2, %v838_v4 }
 0x333   : > { %v1121_v7 = vpop.f32.mrf.mxu1 }
 0x334   : > { %v866_v8 = vadd.f32 %v864_v3, %v852_v6 }
 0x335   : > { %v841_v10 = vpop.f32.mrf.mxu1 }
 0x336   : > { %v1023_v11 = vclamps-f32 %v866_v8, 1.0  ;;  %v853_v12 = vadd.f32 %v1022_v2, %v841_v10 }
 0x337   : > { %v1122_v13 = vpop.f32.mrf.mxu1 }
 0x338   : > { %v872_v14 = vsub.f32 %v1023_v11, %v852_v6  ;;  %v867_v15 = vadd.f32 %v865_v9, %v853_v12  ;;  %908 = vst.msk [vmem:[%s1368_s19] sm:$0xff] %vm899_vm2, %v1023_v11 }
 0x33a   : > { %v874_v16 = vmul.f32 %v872_v14, %v872_v14  ;;  %v1024_v17 = vclamps-f32 %v867_v15, 1.0 }
 0x33c   : > { %v876_v19 = vsub.f32 0.0, %v874_v16  ;;  %v873_v20 = vsub.f32 %v1024_v17, %v853_v12  ;;  %909 = vst.msk [vmem:[%s1368_s19 + $0x8] sm:$0xff] %vm899_vm2, %v1024_v17 }
 0x33e   : > { %v875_v22 = vmul.f32 %v873_v20, %v873_v20  ;;  %v887_v23 = vmul.f32 %v1160_v18, %v876_v19 }
 0x340   : > { %v877_v24 = vsub.f32 0.0, %v875_v22  ;;  %v895_v25 = vsub.f32 %v887_v23, %v1025_v21 }
 0x342   : > { %v897_v26 = vadd.f32 -0.9189385, %v895_v25  ;;  %v888_v27 = vmul.f32 %v1160_v18, %v877_v24 }
 0x344   : > { %v900_v28 = vsel %vm899_vm2, %v897_v26, 0.0  ;;  %v896_v29 = vsub.f32 %v888_v27, %v1025_v21 }
 0x345   : > { %901 = vadd.xlane.f32.xlu0 %v900_v28 }
 0x346   : > { %v898_v30 = vadd.f32 -0.9189385, %v896_v29 }
 0x348   : > { %v903_v31 = vsel %vm899_vm2, %v898_v30, 0.0 }
 0x349   : > { %904 = vadd.xlane.f32.xlu0 %v903_v31 }
 0x3ce   : > { %v902_v32 = vpop.xlane.xlu0 %901 }
 0x3cf   : > { %911 = vst.msk [vmem:[%s1368_s19] sm:$0xff] %vm910_vm3, %v902_v32 }
 0x3d2   : > { %v905_v33 = vpop.xlane.xlu0 %904 }
 0x3d3   : > { %912 = vst.msk [vmem:[%s1368_s19 + $0x8] sm:$0xff] %vm910_vm3, %v905_v33 }
 0x3d4 PF: > { %s22_s21 = sadd.s32 1, %s1167_s21  }
 0x3d5   : > { %p19_p4 = scmp.ge.s32.totalorder %s22_s21, 6  }
 0x3d7   :  { %21 = sbr.rel (!%p19_p4) target bundleno = 1 (0x1), region = 101 }

</bundles_post_ra>
